<compile_context>
chip_gen: v7x
topology: tpu7x:2x2x1
jax: 0.10.0
libtpu: 0.0.40
codegen_flags: <defaults>
</compile_context>

<pallas_src>
import functools
import math

import jax
import jax.numpy as jnp
from jax import lax
from jax.experimental import pallas as pl
from jax.experimental.pallas import tpu as pltpu


# ---------------------------------------------------------------------------
# Tiling / compiler-parameter helpers
# ---------------------------------------------------------------------------

# Scoped-VMEM limit: safe on v5e/v6e (128 MiB physical) and v7x (64 MiB physical).
_VMEM_LIMIT_BYTES = 48 * 1024 * 1024
# Budget used when choosing tile sizes (headroom below the scoped limit for
# double-buffering and compiler scratch).
_VMEM_BUDGET_BYTES = 36 * 1024 * 1024


def _compiler_params(n_grid_axes=1):
    return pltpu.CompilerParams(
        dimension_semantics=("parallel",) * n_grid_axes,
        vmem_limit_bytes=_VMEM_LIMIT_BYTES,
    )


def _round_up(x, m):
    return ((x + m - 1) // m) * m


def _pick_tm(m_rows, per_row_bytes, resident_bytes, tm_max=512):
    """Largest M-tile (multiple of 8, <= tm_max) whose double-buffered activation
    tiles plus resident weights fit the VMEM budget."""
    tm = min(tm_max, _round_up(m_rows, 8))
    tm = max(8, _round_up(tm, 8))
    while tm > 8 and 2 * (resident_bytes + tm * per_row_bytes) > _VMEM_BUDGET_BYTES:
        tm = max(8, _round_up(tm // 2, 8))
    return tm


def _itemsize(x):
    return jnp.dtype(x.dtype).itemsize


# ---------------------------------------------------------------------------
# Pallas kernels
# ---------------------------------------------------------------------------

def _linear_kernel(x_ref, w_ref, b_ref, o_ref):
    # x: (tm, Din), w: (Din, Dout), b: (1, Dout)
    y = jnp.dot(x_ref[...], w_ref[...], preferred_element_type=jnp.float32)
    o_ref[...] = (y + b_ref[...].astype(jnp.float32)).astype(o_ref.dtype)


def pallas_linear(x, w, b):
    """x: [B, L, Din], w: [Din, Dout], b: [Dout] -> [B, L, Dout] (M-tiled)."""
    B, L, Din = x.shape
    Dout = w.shape[1]
    M = B * L
    x2 = x.reshape(M, Din)

    per_row = Din * _itemsize(x) + Dout * _itemsize(x)
    resident = (Din * Dout + Dout) * _itemsize(w)
    tm = _pick_tm(M, per_row, resident)

    out = pl.pallas_call(
        _linear_kernel,
        grid=(pl.cdiv(M, tm),),
        in_specs=[
            pl.BlockSpec((tm, Din), lambda i: (i, 0)),
            pl.BlockSpec((Din, Dout), lambda i: (0, 0)),   # weight VMEM-resident
            pl.BlockSpec((1, Dout), lambda i: (0, 0)),     # bias VMEM-resident
        ],
        out_specs=pl.BlockSpec((tm, Dout), lambda i: (i, 0)),
        out_shape=jax.ShapeDtypeStruct((M, Dout), x.dtype),
        compiler_params=_compiler_params(1),
    )(x2, w, b.reshape(1, Dout))
    return out.reshape(B, L, Dout)


def _attn_kernel(qkv_ref, o_ref, *, n_head, scale):
    # qkv_ref: (1, L, 3*D) for one batch; all heads handled in one grid step.
    qkv = qkv_ref[0]
    L, three_d = qkv.shape
    d_model = three_d // 3
    dh = d_model // n_head
    q = qkv[:, 0:d_model]
    k = qkv[:, d_model:2 * d_model]
    v = qkv[:, 2 * d_model:3 * d_model]

    # Contract last dims of q and k directly (no explicit .T / XLU transpose).
    nt_dims = (((1,), (1,)), ((), ()))
    outs = []
    for h in range(n_head):
        sl = slice(h * dh, (h + 1) * dh)
        qh, kh, vh = q[:, sl], k[:, sl], v[:, sl]
        s = lax.dot_general(qh, kh, nt_dims,
                            preferred_element_type=jnp.float32) * scale
        s = s - jnp.max(s, axis=-1, keepdims=True)
        p = jnp.exp(s)
        # Softmax denominator on the EUP (free VLIW slot) instead of VPU divide.
        p = p * pl.reciprocal(jnp.sum(p, axis=-1, keepdims=True), approx=True)
        outs.append(jnp.dot(p.astype(vh.dtype), vh,
                            preferred_element_type=jnp.float32))
    # Heads concatenated back into d_model order -> single lane-dense store.
    o_ref[0] = jnp.concatenate(outs, axis=-1).astype(o_ref.dtype)


def pallas_attention(qkv, n_head):
    """qkv: [B, L, 3*D] (fused Q|K|V). Returns head-concatenated [B, L, D]."""
    B, L, three_d = qkv.shape
    d_model = three_d // 3
    dh = d_model // n_head
    out = pl.pallas_call(
        functools.partial(_attn_kernel, n_head=n_head, scale=1.0 / math.sqrt(dh)),
        grid=(B,),
        in_specs=[pl.BlockSpec((1, L, three_d), lambda b: (b, 0, 0))],
        out_specs=pl.BlockSpec((1, L, d_model), lambda b: (b, 0, 0)),
        out_shape=jax.ShapeDtypeStruct((B, L, d_model), qkv.dtype),
        compiler_params=_compiler_params(1),
    )(qkv)
    return out


def _layernorm_f32(x, gamma, beta, eps):
    # PyTorch-reference semantics: torch.std (ddof=1), divide by (std + eps).
    d = x.shape[-1]
    mean = jnp.mean(x, axis=-1, keepdims=True)
    xc = x - mean
    var = jnp.sum(xc * xc, axis=-1, keepdims=True) * (1.0 / (d - 1))
    std = jnp.sqrt(var)
    inv = pl.reciprocal(std + eps, approx=True)
    return gamma.astype(jnp.float32) * (xc * inv) + beta.astype(jnp.float32)


def _proj_add_ln_kernel(a_ref, r_ref, w_ref, b_ref, g_ref, be_ref, o_ref, *, eps):
    # (a @ w + b + residual) -> LayerNorm, all in one pass over the M-tile.
    y = jnp.dot(a_ref[...], w_ref[...], preferred_element_type=jnp.float32)
    y = y + b_ref[...].astype(jnp.float32) + r_ref[...].astype(jnp.float32)
    o_ref[...] = _layernorm_f32(y, g_ref[...], be_ref[...], eps).astype(o_ref.dtype)


def pallas_proj_add_layernorm(a, res, w, b, gamma, beta, eps=1e-12):
    """LayerNorm(a @ w + b + res). a, res: [B, L, D]."""
    B, L, D = a.shape
    M = B * L
    per_row = 3 * D * _itemsize(a)                       # a tile + res tile + out tile
    resident = (D * D + 3 * D) * _itemsize(w)
    tm = _pick_tm(M, per_row, resident)

    out = pl.pallas_call(
        functools.partial(_proj_add_ln_kernel, eps=eps),
        grid=(pl.cdiv(M, tm),),
        in_specs=[
            pl.BlockSpec((tm, D), lambda i: (i, 0)),
            pl.BlockSpec((tm, D), lambda i: (i, 0)),
            pl.BlockSpec((D, D), lambda i: (0, 0)),
            pl.BlockSpec((1, D), lambda i: (0, 0)),
            pl.BlockSpec((1, D), lambda i: (0, 0)),
            pl.BlockSpec((1, D), lambda i: (0, 0)),
        ],
        out_specs=pl.BlockSpec((tm, D), lambda i: (i, 0)),
        out_shape=jax.ShapeDtypeStruct((M, D), a.dtype),
        compiler_params=_compiler_params(1),
    )(a.reshape(M, D), res.reshape(M, D), w, b.reshape(1, D),
      gamma.reshape(1, D), beta.reshape(1, D))
    return out.reshape(B, L, D)


def _ffn_add_ln_kernel(x_ref, w1_ref, b1_ref, w2_ref, b2_ref, g_ref, be_ref,
                       o_ref, *, eps):
    # LayerNorm(relu(x @ w1 + b1) @ w2 + b2 + x); the input x IS the residual.
    x = x_ref[...]
    h = jnp.dot(x, w1_ref[...], preferred_element_type=jnp.float32)
    h = jnp.maximum(h + b1_ref[...].astype(jnp.float32), 0.0)
    y = jnp.dot(h.astype(w2_ref.dtype), w2_ref[...],
                preferred_element_type=jnp.float32)
    y = y + b2_ref[...].astype(jnp.float32) + x.astype(jnp.float32)
    o_ref[...] = _layernorm_f32(y, g_ref[...], be_ref[...], eps).astype(o_ref.dtype)


def pallas_ffn_add_layernorm(x, w1, b1, w2, b2, gamma, beta, eps=1e-12):
    """LayerNorm(relu(x @ w1 + b1) @ w2 + b2 + x). x: [B, L, D]."""
    B, L, D = x.shape
    H = w1.shape[1]
    M = B * L
    per_row = 2 * D * _itemsize(x) + H * 4               # x + out tiles + f32 hidden
    resident = (D * H + H * D + H + 3 * D) * _itemsize(w1)
    tm = _pick_tm(M, per_row, resident)

    out = pl.pallas_call(
        functools.partial(_ffn_add_ln_kernel, eps=eps),
        grid=(pl.cdiv(M, tm),),
        in_specs=[
            pl.BlockSpec((tm, D), lambda i: (i, 0)),
            pl.BlockSpec((D, H), lambda i: (0, 0)),
            pl.BlockSpec((1, H), lambda i: (0, 0)),
            pl.BlockSpec((H, D), lambda i: (0, 0)),
            pl.BlockSpec((1, D), lambda i: (0, 0)),
            pl.BlockSpec((1, D), lambda i: (0, 0)),
            pl.BlockSpec((1, D), lambda i: (0, 0)),
        ],
        out_specs=pl.BlockSpec((tm, D), lambda i: (i, 0)),
        out_shape=jax.ShapeDtypeStruct((M, D), x.dtype),
        compiler_params=_compiler_params(1),
    )(x.reshape(M, D), w1, b1.reshape(1, H), w2, b2.reshape(1, D),
      gamma.reshape(1, D), beta.reshape(1, D))
    return out.reshape(B, L, D)


# ---------------------------------------------------------------------------
# Parameter construction (deterministic, torch-Linear-style uniform init)
# ---------------------------------------------------------------------------

def _linear_params(key, d_in, d_out):
    kw, kb = jax.random.split(key)
    bound = 1.0 / math.sqrt(d_in)
    w = jax.random.uniform(kw, (d_in, d_out), jnp.float32, -bound, bound)
    b = jax.random.uniform(kb, (d_out,), jnp.float32, -bound, bound)
    return {"w": w, "b": b}


def init_tu_encoder(key, input_size, d_model, ffn_hidden, n_head, n_layers):
    keys = jax.random.split(key, 2 + n_layers)
    params = {
        "layer1": _linear_params(keys[0], input_size, d_model),
        "layer2": _linear_params(keys[1], d_model, 1),
        "layers": [],
        "n_head": n_head,
    }
    for li in range(n_layers):
        lk = jax.random.split(keys[2 + li], 8)
        layer = {
            "w_q": _linear_params(lk[0], d_model, d_model),
            "w_k": _linear_params(lk[1], d_model, d_model),
            "w_v": _linear_params(lk[2], d_model, d_model),
            "w_concat": _linear_params(lk[3], d_model, d_model),
            "ffn1": _linear_params(lk[4], d_model, ffn_hidden),
            "ffn2": _linear_params(lk[5], ffn_hidden, d_model),
            "norm1_gamma": jnp.ones((d_model,), jnp.float32),
            "norm1_beta": jnp.zeros((d_model,), jnp.float32),
            "norm2_gamma": jnp.ones((d_model,), jnp.float32),
            "norm2_beta": jnp.zeros((d_model,), jnp.float32),
        }
        # Pre-fused QKV projection weight [D, 3D] / bias [3D] (one matmul kernel).
        layer["w_qkv"] = {
            "w": jnp.concatenate(
                [layer["w_q"]["w"], layer["w_k"]["w"], layer["w_v"]["w"]], axis=1),
            "b": jnp.concatenate(
                [layer["w_q"]["b"], layer["w_k"]["b"], layer["w_v"]["b"]], axis=0),
        }
        params["layers"].append(layer)
    return params


def cast_params(params, dtype):
    """Cast all float32 arrays to `dtype` (e.g. bf16 mixed-precision storage)."""
    def _cast(a):
        if hasattr(a, "dtype") and a.dtype == jnp.float32:
            return a.astype(dtype)
        return a
    return jax.tree_util.tree_map(_cast, params)


# ---------------------------------------------------------------------------
# Forward pass (glue in plain JAX, compute in Pallas kernels)
# ---------------------------------------------------------------------------

def multi_head_attention(p, x, n_head):
    qkv = pallas_linear(x, p["w_qkv"]["w"], p["w_qkv"]["b"])   # [B, L, 3D]
    return pallas_attention(qkv, n_head)                       # [B, L, D], heads concat'd


def encoder_layer(p, x, n_head):
    a = multi_head_attention(p, x, n_head)
    # fused: w_concat projection + residual add + LayerNorm1
    x = pallas_proj_add_layernorm(a, x, p["w_concat"]["w"], p["w_concat"]["b"],
                                  p["norm1_gamma"], p["norm1_beta"])
    # fused: FFN (lin1 -> relu -> lin2) + residual add + LayerNorm2
    x = pallas_ffn_add_layernorm(x, p["ffn1"]["w"], p["ffn1"]["b"],
                                 p["ffn2"]["w"], p["ffn2"]["b"],
                                 p["norm2_gamma"], p["norm2_beta"])
    return x


def tu_encoder_forward(params, x, s_mask=None):
    # s_mask accepted for signature parity; the reference attention ignores it.
    x = pallas_linear(x, params["layer1"]["w"], params["layer1"]["b"])
    for layer_p in params["layers"]:
        x = encoder_layer(layer_p, x, params["n_head"])
    x = pallas_linear(x, params["layer2"]["w"], params["layer2"]["b"])
    return x


# ---------------------------------------------------------------------------
# Pure-JAX reference (sanity check of the Pallas path)
# ---------------------------------------------------------------------------

def _ref_linear(x, w, b):
    return x @ w + b


def _ref_layernorm(x, g, be, eps=1e-12):
    mean = jnp.mean(x, axis=-1, keepdims=True)
    std = jnp.std(x, axis=-1, keepdims=True, ddof=1)
    return g * ((x - mean) / (std + eps)) + be


def _ref_split_heads(t, n_head):
    B, L, D = t.shape
    dh = D // n_head
    return t.reshape(B, L, n_head, dh).transpose(0, 2, 1, 3)


def _ref_concat_heads(t):
    B, H, L, Dh = t.shape
    return t.transpose(0, 2, 1, 3).reshape(B, L, H * Dh)


def tu_encoder_reference(params, x):
    n_head = params["n_head"]
    x = _ref_linear(x, params["layer1"]["w"], params["layer1"]["b"])
    for p in params["layers"]:
        res = x
        q = _ref_split_heads(_ref_linear(x, p["w_q"]["w"], p["w_q"]["b"]), n_head)
        k = _ref_split_heads(_ref_linear(x, p["w_k"]["w"], p["w_k"]["b"]), n_head)
        v = _ref_split_heads(_ref_linear(x, p["w_v"]["w"], p["w_v"]["b"]), n_head)
        score = jnp.einsum("bhqd,bhkd->bhqk", q, k) / math.sqrt(q.shape[-1])
        score = jax.nn.softmax(score, axis=-1)
        out = _ref_concat_heads(jnp.einsum("bhqk,bhkd->bhqd", score, v))
        out = _ref_linear(out, p["w_concat"]["w"], p["w_concat"]["b"])
        x = _ref_layernorm(out + res, p["norm1_gamma"], p["norm1_beta"])
        res = x
        h = jnp.maximum(_ref_linear(x, p["ffn1"]["w"], p["ffn1"]["b"]), 0.0)
        h = _ref_linear(h, p["ffn2"]["w"], p["ffn2"]["b"])
        x = _ref_layernorm(h + res, p["norm2_gamma"], p["norm2_beta"])
    return _ref_linear(x, params["layer2"]["w"], params["layer2"]["b"])


# ---------------------------------------------------------------------------
# Main
# ---------------------------------------------------------------------------

if __name__ == "__main__":
    # Small shapes consistent with the module's forward.
    batch, length = 2, 8
    input_size, d_model, ffn_hidden, n_head, n_layers = 16, 32, 64, 4, 2

    root = jax.random.PRNGKey(0)
    k_param, k_x = jax.random.split(root)

    params = init_tu_encoder(k_param, input_size, d_model, ffn_hidden, n_head, n_layers)
    x = jax.random.normal(k_x, (batch, length, input_size), jnp.float32)
    s_mask = None  # unused by the reference attention

    # f32 path: strict check against the pure-JAX reference.
    out = jax.block_until_ready(tu_encoder_forward(params, x, s_mask))
    assert out.shape == (batch, length, 1), out.shape
    ref = jax.block_until_ready(tu_encoder_reference(params, x))
    err = float(jnp.max(jnp.abs(out - ref)))
    assert jnp.allclose(out, ref, rtol=1e-2, atol=1e-2), err

    # bf16 mixed-precision path (bf16 storage / MXU inputs, f32 accumulation and
    # LN/softmax math) — loose check only.
    params_bf16 = cast_params(params, jnp.bfloat16)
    out_bf16 = jax.block_until_ready(
        tu_encoder_forward(params_bf16, x.astype(jnp.bfloat16), s_mask))
    assert out_bf16.shape == (batch, length, 1), out_bf16.shape
    out_bf16_f32 = out_bf16.astype(jnp.float32)
    assert bool(jnp.all(jnp.isfinite(out_bf16_f32)))
    assert jnp.allclose(out_bf16_f32, ref, rtol=1.5e-1, atol=1.5e-1), \
        float(jnp.max(jnp.abs(out_bf16_f32 - ref)))

    print("KERNEL_OK")
</pallas_src>

<mosaic_0001>
module attributes {stable_mosaic.version = 11 : i64} {
  func.func @_linear_kernel(%arg0: i32, %arg1: memref<16x16xf32, #tpu.memory_space<vmem>>, %arg2: memref<16x32xf32, #tpu.memory_space<vmem>>, %arg3: memref<1x32xf32, #tpu.memory_space<vmem>>, %arg4: memref<16x32xf32, #tpu.memory_space<vmem>>) attributes {dimension_semantics = [#tpu.dimension_semantics<parallel>], iteration_bounds = array<i64: 1>, scalar_prefetch = 0 : i64, scratch_operands = 0 : i64, tpu.core_type = #tpu.core_type<tc>, window_params = [{transform_indices = @transform_0, window_bounds = array<i64: 16, 16>}, {pipeline_mode = #tpu.pipeline_mode<synchronous>, transform_indices = @transform_1, window_bounds = array<i64: 16, 32>}, {pipeline_mode = #tpu.pipeline_mode<synchronous>, transform_indices = @transform_2, window_bounds = array<i64: 1, 32>}, {transform_indices = @transform_3, window_bounds = array<i64: 16, 32>}]} {
    %c0 = arith.constant 0 : index
    %c0_0 = arith.constant 0 : index
    %0 = vector.load %arg1[%c0, %c0_0] : memref<16x16xf32, #tpu.memory_space<vmem>>, vector<16x16xf32>
    %c0_1 = arith.constant 0 : index
    %c0_2 = arith.constant 0 : index
    %1 = vector.load %arg2[%c0_1, %c0_2] : memref<16x32xf32, #tpu.memory_space<vmem>>, vector<16x32xf32>
    %cst = arith.constant dense<0.000000e+00> : vector<16x32xf32>
    %2 = tpu.matmul %0, %1, %cst {dimension_numbers = #tpu.dot_dimension_numbers<[1], [0], [0], [1], [0, 0, 1, 1], [], []>} : vector<16x16xf32>, vector<16x32xf32>, vector<16x32xf32> -> vector<16x32xf32>
    %c0_3 = arith.constant 0 : index
    %c0_4 = arith.constant 0 : index
    %3 = vector.load %arg3[%c0_3, %c0_4] : memref<1x32xf32, #tpu.memory_space<vmem>>, vector<1x32xf32>
    %4 = vector.broadcast %3 : vector<1x32xf32> to vector<16x32xf32>
    %5 = arith.addf %2, %4 : vector<16x32xf32>
    %c0_5 = arith.constant 0 : index
    %c0_6 = arith.constant 0 : index
    %6 = vector.load %arg4[%c0_5, %c0_6] : memref<16x32xf32, #tpu.memory_space<vmem>>, vector<16x32xf32>
    tpu.vector_store %arg4[%c0_5, %c0_6], %5 {strides = array<i32>} : memref<16x32xf32, #tpu.memory_space<vmem>>, vector<16x32xf32>,
    return
  }
  func.func @transform_0(%arg0: i32) -> (i32, i32) {
    %c0_i32 = arith.constant 0 : i32
    %c0_i32_0 = arith.constant 0 : i32
    return %arg0, %c0_i32 : i32, i32
  }
  func.func @transform_1(%arg0: i32) -> (i32, i32) {
    %c0_i32 = arith.constant 0 : i32
    %c0_i32_0 = arith.constant 0 : i32
    %c0_i32_1 = arith.constant 0 : i32
    return %c0_i32, %c0_i32_0 : i32, i32
  }
  func.func @transform_2(%arg0: i32) -> (i32, i32) {
    %c0_i32 = arith.constant 0 : i32
    %c0_i32_0 = arith.constant 0 : i32
    %c0_i32_1 = arith.constant 0 : i32
    return %c0_i32, %c0_i32_0 : i32, i32
  }
  func.func @transform_3(%arg0: i32) -> (i32, i32) {
    %c0_i32 = arith.constant 0 : i32
    %c0_i32_0 = arith.constant 0 : i32
    return %arg0, %c0_i32 : i32, i32
  }
}

</mosaic_0001>

<bundles_post_ra>
// kernel: tpu_custom_call.1
= control target key start
LH: loop header
LB: loop body
LE: loop exit
PB: predicated region body
PF: predicated region fallthrough
CT: control target
= control target key end

     0   :  { %8 = vsyncpa [#allocation3], 0  ;;  %s325_s0 = inlined_call_operand.hbm [shape: f32[16,16], index: 0, kind: input, shape index: {}]   ;;  %s326_s1 = inlined_call_operand.hbm [shape: f32[16,32], index: 1, kind: input, shape index: {}]   ;;  %s327_s2 = inlined_call_operand.vmem [shape: f32[1,32], index: 2, kind: input, shape index: {}]   ;;  %s328_s3 = inlined_call_operand.hbm [shape: f32[16,32], index: 3, kind: output, shape index: {}]  }
   0x1   :  { %9 = vsyncpa [#allocation6], 0 }
   0x2   :  { %10 = vsyncpa [#allocation4], 0  ;;  %s252_s12 = smov [#allocation2]   ;;  %s180_s16 = scalar_lea.hbm %s325_s0, 256 }
   0x3   :  { %s16_s13 = sshll.u32 %s252_s12, 4  ;;  %p181_p0 = scmp.ne.s32.totalorder %s325_s0, %s180_s16  ;;  %s17_s13 = int_to_ptr.vmem [resolvable:$true] %s16_s13 }
   0x4   :  { %p184_p1 = scmp.lt.u32.totalorder %s180_s16, %s325_s0 }
   0x6   :  { %p186_p2 = pnand %p184_p1, %p181_p0 }
   0x8   :  { %189 = shalt.err (!%p186_p2)
}
   0x9   :  { %s190_s21 = scalar_lea.vmem %s17_s13, 256  ;;  %p195_p4 = scmp.lt.s32.totalorder %s17_s13, %s17_s13 }
   0xa   :  { %p191_p3 = scmp.ne.s32.totalorder %s17_s13, %s190_s21  ;;  %p196_p5 = scmp.lt.s32.totalorder %s190_s21, %s190_s21 }
   0xc   :  { %p197_p6 = por %p196_p5, %p195_p4 }
   0xe   :  { %p198_p7 = pnand %p197_p6, %p191_p3 }
  0x10   :  { %201 = shalt.err (!%p198_p7)
}
  0x11   :  { %s253_s22 = smov 128   ;;  %s254_s23 = smov 8  }
  0x12   :  { %22 = dma.hbm_to_vmem [thread:$0]  %s325_s0, 256, %s17_s13, [#allocation3], %s253_s22, %s253_s22, %s254_s23  }
  0x13   :  { %s255_s26 = smov [#allocation5]   ;;  %s202_s30 = scalar_lea.hbm %s326_s1, 256 }
  0x14   :  { %s28_s27 = sshll.u32 %s255_s26, 4  ;;  %p203_p8 = scmp.ne.s32.totalorder %s326_s1, %s202_s30  ;;  %s29_s27 = int_to_ptr.vmem [resolvable:$true] %s28_s27 }
  0x15   :  { %p206_p9 = scmp.lt.u32.totalorder %s202_s30, %s326_s1 }
  0x17   :  { %p208_p10 = pnand %p206_p9, %p203_p8 }
  0x19   :  { %211 = shalt.err (!%p208_p10)
}
  0x1a   :  { %s212_s8 = scalar_lea.vmem %s29_s27, 256  ;;  %p217_p12 = scmp.lt.s32.totalorder %s29_s27, %s29_s27 }
  0x1b   :  { %p213_p11 = scmp.ne.s32.totalorder %s29_s27, %s212_s8  ;;  %p218_p13 = scmp.lt.s32.totalorder %s212_s8, %s212_s8 }
  0x1d   :  { %p219_p0 = por %p218_p13, %p217_p12 }
  0x1f   :  { %p220_p1 = pnand %p219_p0, %p213_p11 }
  0x21   :  { %223 = shalt.err (!%p220_p1)
}
  0x22   :  { %34 = dma.hbm_to_vmem [thread:$0]  %s326_s1, 256, %s29_s27, [#allocation6], %s253_s22, %s253_s22, %s254_s23  }
  0x23   :  { %246 = dma.done.wait [#allocation3], 256  }
  0x24   :  { %247 = vsyncadd [#allocation3], 4294967040 }
  0x25   :  { %248 = dma.done.wait [#allocation6], 256  }
  0x26   :  { %249 = vsyncadd [#allocation6], 4294967040  ;;  %vm54_vm0 = vcmask 130048   ;;  %v45_v0 = vld [vmem:[#allocation5] sm:$0xff]  ;;  %v46_v1 = vld [vmem:[#allocation5 + $0x8] sm:$0xff]  ;;  %s256_s12 = smov [#allocation7]  }
  0x27   :  { %v43_v2 = vld [vmem:[#allocation2] sm:$0xff]  ;;  %v171_v3 = vpack.c.bf16 %v46_v1, %v45_v0  ;;  %v44_v4 = vld [vmem:[#allocation2 + $0x8] sm:$0xff]  ;;  %s144_s1 = sshll.u32 %s256_s12, 4  ;;  %vm136_vm1 = vcmask 261120   ;;  %s145_s1 = int_to_ptr.vmem [resolvable:$true] %s144_s1 }
  0x28   :  { %168 = vmatprep.mubr.msk.f32.mxu0 %vm54_vm0, %v43_v2  ;;  %v157_v5 = vld [vmem:[%s327_s2] ss:$0 sm:$0xff]  ;;  %s224_s13 = scalar_lea.vmem %s145_s1, 256  ;;  %p229_p3 = scmp.lt.s32.totalorder %s145_s1, %s145_s1 }
  0x29   :  { %172 = vmatprep.subr.bf16.mxu0 %v171_v3  ;;  %p225_p2 = scmp.ne.s32.totalorder %s145_s1, %s224_s13  ;;  %p230_p4 = scmp.lt.s32.totalorder %s224_s13, %s224_s13 }
  0x2a   :  { %174 = vmatpush3.bf16.msra.mxu0 %v171_v3 }
  0x2b   :  { %p231_p5 = por %p230_p4, %p229_p3 }
  0x2d   :  { %169 = vmatmul.mubr.msk.f32.vlgmr.msra.gmra.mrb[0].mxu0 %vm54_vm0, %v44_v4  ;;  %p232_p6 = pnand %p231_p5, %p225_p2 }
 0x100   :  { %v170_v6 = vpop.f32.mrb[0].mxu0 }
 0x101   :  { %v133_v7 = vadd.f32 %v170_v6, %v157_v5  ;;  %v127_v8 = vpop.f32.mrb[1].mxu0 }
 0x102   :  { %v128_v9 = vadd.f32 %v157_v5, %v127_v8 }
 0x103   :  { %138 = vst.msk [vmem:[#allocation7 + $0x8] sm:$0xff] %vm136_vm1, %v133_v7 }
 0x104   :  { %137 = vst.msk [vmem:[#allocation7] sm:$0xff] %vm136_vm1, %v128_v9 }
 0x105   :  { %235 = shalt.err (!%p232_p6)
}
 0x106   :  { %s236_s2 = scalar_lea.hbm %s328_s3, 256 }
 0x107   :  { %p237_p7 = scmp.ne.s32.totalorder %s328_s3, %s236_s2  ;;  %p240_p8 = scmp.lt.u32.totalorder %s236_s2, %s328_s3 }
 0x109   :  { %p242_p9 = pnand %p240_p8, %p237_p7 }
 0x10b   :  { %245 = shalt.err (!%p242_p9)
}
 0x10c   :  { %150 = dma.vmem_to_hbm [thread:$0]  %s145_s1, 256, %s328_s3, [#allocation4], %s253_s22, %s253_s22, %s254_s23  }
 0x10d   :  { %250 = dma.done.wait [#allocation4], 256  }
 0x10e   :  { %251 = vsyncadd [#allocation4], 4294967040 }
 0x10f   :  { %154 = vsyncpa [#allocation3], 1 }
 0x110   :  { %155 = vsyncpa [#allocation6], 1 }
 0x111   :  { %156 = vsyncpa [#allocation4], 1 }

</bundles_post_ra>
